<compile_context>
chip_gen: v7x
topology: tpu7x:2x2x1
jax: 0.10.0
libtpu: 0.0.40
codegen_flags: <defaults>
</compile_context>

<pallas_src>
import jax
import jax.numpy as jnp
from jax.experimental import pallas as pl
from jax.experimental.pallas import tpu as pltpu

IN_F, H1, H2, OUT_F = 784, 300, 100, 10
H1_PAD, H2_PAD = 384, 128   # lane-multiple padded hidden widths


def _round_up(x, m):
    return ((x + m - 1) // m) * m


def lenet_kernel(x_ref, w1_ref, w2_ref, w3_ref, o_ref):
    # x_ref:  [TB, 784]  bf16 batch tile
    # w1_ref: [784, 384], w2_ref: [384, 128], w3_ref: [128, 10]  bf16,
    #         zero-padded and pre-transposed so every matmul is a
    #         lane-dense x @ W on the MXU.
    x = x_ref[...]

    # fc1 + relu (f32 accumulation, elementwise in f32)
    h1 = jnp.dot(x, w1_ref[...], preferred_element_type=jnp.float32)      # [TB, 384]
    h1 = jnp.maximum(h1, 0.0)

    # fc2 + relu
    h2 = jnp.dot(h1.astype(jnp.bfloat16), w2_ref[...],
                 preferred_element_type=jnp.float32)                       # [TB, 128]
    h2 = jnp.maximum(h2, 0.0)

    # fc3
    logits = jnp.dot(h2.astype(jnp.bfloat16), w3_ref[...],
                     preferred_element_type=jnp.float32)                   # [TB, 10]

    # log_softmax over the feature axis, in f32
    m = jnp.max(logits, axis=-1, keepdims=True)
    shifted = logits - m
    lse = jnp.log(jnp.sum(jnp.exp(shifted), axis=-1, keepdims=True))
    o_ref[...] = (shifted - lse).astype(o_ref.dtype)


def prepare_lenet_params(w1, w2, w3):
    """One-time weight prep (hoisted out of the per-call path).

    w1: [300, 784], w2: [100, 300], w3: [10, 100]  (PyTorch nn.Linear layout).
    Returns transposed, zero-padded, bf16 weights:
      [784, 384], [384, 128], [128, 10].
    Padded rows/columns are exact zeros, so ReLU(0)=0 keeps the math identical.
    """
    w1t = jnp.zeros((IN_F, H1_PAD), jnp.bfloat16).at[:, :H1].set(
        w1.T.astype(jnp.bfloat16))
    w2t = jnp.zeros((H1_PAD, H2_PAD), jnp.bfloat16).at[:H1, :H2].set(
        w2.T.astype(jnp.bfloat16))
    w3t = jnp.zeros((H2_PAD, OUT_F), jnp.bfloat16).at[:H2, :].set(
        w3.T.astype(jnp.bfloat16))
    return w1t, w2t, w3t


@jax.jit
def lenet_forward(x, w1t, w2t, w3t):
    """x: anything that flattens to [-1, 784] (e.g. [B,1,28,28] NCHW).
    w1t/w2t/w3t: outputs of prepare_lenet_params()."""
    x2d = x.reshape(-1, IN_F)
    B = x2d.shape[0]

    # Batch tile: multiple of 8 sublanes, capped at 256 (sweepable 256-1024).
    TB = min(256, _round_up(B, 8))
    B_pad = _round_up(B, TB)
    n_tiles = B_pad // TB

    xb = x2d.astype(jnp.bfloat16)
    if B_pad != B:
        xb = jnp.pad(xb, ((0, B_pad - B), (0, 0)))

    flops = 2 * B_pad * (IN_F * H1 + H1 * H2 + H2 * OUT_F)
    bytes_accessed = (B_pad * IN_F * 2                        # x tiles (bf16)
                      + (IN_F * H1_PAD + H1_PAD * H2_PAD + H2_PAD * OUT_F) * 2
                      + B_pad * OUT_F * 4)                    # output (f32)

    out = pl.pallas_call(
        lenet_kernel,
        out_shape=jax.ShapeDtypeStruct((B_pad, OUT_F), jnp.float32),
        grid=(n_tiles,),
        in_specs=[
            pl.BlockSpec((TB, IN_F), lambda i: (i, 0)),          # x: tiled over batch
            pl.BlockSpec((IN_F, H1_PAD), lambda i: (0, 0)),      # weights: VMEM-resident
            pl.BlockSpec((H1_PAD, H2_PAD), lambda i: (0, 0)),
            pl.BlockSpec((H2_PAD, OUT_F), lambda i: (0, 0)),
        ],
        out_specs=pl.BlockSpec((TB, OUT_F), lambda i: (i, 0)),
        compiler_params=pltpu.CompilerParams(
            dimension_semantics=("parallel",)),
        cost_estimate=pl.CostEstimate(
            flops=flops,
            transcendentals=B_pad * (OUT_F + 1),
            bytes_accessed=bytes_accessed),
    )(xb, w1t, w2t, w3t)

    return out[:B]


def lenet_reference(x, w1, w2, w3):
    """Pure-JAX reference matching the kernel's numerics (bf16 matmul inputs,
    f32 accumulation), same forward semantics as the PyTorch module."""
    x2d = x.reshape(-1, IN_F)
    h1 = jnp.maximum(
        jnp.dot(x2d.astype(jnp.bfloat16), w1.T.astype(jnp.bfloat16),
                preferred_element_type=jnp.float32), 0.0)
    h2 = jnp.maximum(
        jnp.dot(h1.astype(jnp.bfloat16), w2.T.astype(jnp.bfloat16),
                preferred_element_type=jnp.float32), 0.0)
    logits = jnp.dot(h2.astype(jnp.bfloat16), w3.T.astype(jnp.bfloat16),
                     preferred_element_type=jnp.float32)
    return jax.nn.log_softmax(logits, axis=1)


if __name__ == "__main__":
    key = jax.random.PRNGKey(0)
    kx, k1, k2, k3 = jax.random.split(key, 4)

    # Small deterministic NCHW input like the PyTorch module expects: [2, 1, 28, 28]
    x = jax.random.normal(kx, (2, 1, 28, 28), dtype=jnp.float32)

    # Deterministic synthetic parameters (PyTorch nn.Linear layout: [out, in])
    w1 = jax.random.normal(k1, (300, 784), dtype=jnp.float32) * (1.0 / 784 ** 0.5)
    w2 = jax.random.normal(k2, (100, 300), dtype=jnp.float32) * (1.0 / 300 ** 0.5)
    w3 = jax.random.normal(k3, (10, 100), dtype=jnp.float32) * (1.0 / 100 ** 0.5)

    # One-time weight preparation (transpose + pad + bf16).
    w1t, w2t, w3t = prepare_lenet_params(w1, w2, w3)

    # Small-batch check (single tile, padded batch).
    out = jax.block_until_ready(lenet_forward(x, w1t, w2t, w3t))
    ref = lenet_reference(x, w1, w2, w3)
    assert out.shape == (2, 10)
    assert jnp.allclose(out, ref, atol=5e-3, rtol=5e-3), "mismatch vs reference (B=2)"

    # Multi-tile check (B=300 -> TB=256, 2 grid steps) to exercise the batch pipeline.
    xb = jax.random.normal(kx, (300, 1, 28, 28), dtype=jnp.float32)
    outb = jax.block_until_ready(lenet_forward(xb, w1t, w2t, w3t))
    refb = lenet_reference(xb, w1, w2, w3)
    assert outb.shape == (300, 10)
    assert jnp.allclose(outb, refb, atol=5e-3, rtol=5e-3), "mismatch vs reference (B=300)"

    print("KERNEL_OK")
</pallas_src>

<mosaic_0001>
module attributes {stable_mosaic.version = 11 : i64} {
  func.func @lenet_kernel(%arg0: i32, %arg1: memref<8x784xbf16, #tpu.memory_space<vmem>>, %arg2: memref<784x384xbf16, #tpu.memory_space<vmem>>, %arg3: memref<384x128xbf16, #tpu.memory_space<vmem>>, %arg4: memref<128x10xbf16, #tpu.memory_space<vmem>>, %arg5: memref<8x10xf32, #tpu.memory_space<vmem>>) attributes {dimension_semantics = [#tpu.dimension_semantics<parallel>], iteration_bounds = array<i64: 1>, scalar_prefetch = 0 : i64, scratch_operands = 0 : i64, tpu.core_type = #tpu.core_type<tc>, window_params = [{transform_indices = @transform_0, window_bounds = array<i64: 8, 784>}, {pipeline_mode = #tpu.pipeline_mode<synchronous>, transform_indices = @transform_1, window_bounds = array<i64: 784, 384>}, {pipeline_mode = #tpu.pipeline_mode<synchronous>, transform_indices = @transform_2, window_bounds = array<i64: 384, 128>}, {pipeline_mode = #tpu.pipeline_mode<synchronous>, transform_indices = @transform_3, window_bounds = array<i64: 128, 10>}, {transform_indices = @transform_4, window_bounds = array<i64: 8, 10>}]} {
    %c0 = arith.constant 0 : index
    %c0_0 = arith.constant 0 : index
    %0 = vector.load %arg1[%c0, %c0_0] : memref<8x784xbf16, #tpu.memory_space<vmem>>, vector<8x784xbf16>
    %c0_1 = arith.constant 0 : index
    %c0_2 = arith.constant 0 : index
    %1 = vector.load %arg2[%c0_1, %c0_2] : memref<784x384xbf16, #tpu.memory_space<vmem>>, vector<784x384xbf16>
    %cst = arith.constant dense<0.000000e+00> : vector<8x384xf32>
    %2 = tpu.matmul %0, %1, %cst {dimension_numbers = #tpu.dot_dimension_numbers<[1], [0], [0], [1], [0, 0, 1, 1], [], []>} : vector<8x784xbf16>, vector<784x384xbf16>, vector<8x384xf32> -> vector<8x384xf32>
    %cst_3 = arith.constant 0.000000e+00 : f32
    %3 = vector.broadcast %cst_3 : f32 to vector<8x384xf32>
    %4 = arith.maximumf %2, %3 : vector<8x384xf32>
    %5 = arith.truncf %4 : vector<8x384xf32> to vector<8x384xbf16>
    %c0_4 = arith.constant 0 : index
    %c0_5 = arith.constant 0 : index
    %6 = vector.load %arg3[%c0_4, %c0_5] : memref<384x128xbf16, #tpu.memory_space<vmem>>, vector<384x128xbf16>
    %cst_6 = arith.constant dense<0.000000e+00> : vector<8x128xf32>
    %7 = tpu.matmul %5, %6, %cst_6 {dimension_numbers = #tpu.dot_dimension_numbers<[1], [0], [0], [1], [0, 0, 1, 1], [], []>} : vector<8x384xbf16>, vector<384x128xbf16>, vector<8x128xf32> -> vector<8x128xf32>
    %cst_7 = arith.constant 0.000000e+00 : f32
    %8 = vector.broadcast %cst_7 : f32 to vector<8x128xf32>
    %9 = arith.maximumf %7, %8 : vector<8x128xf32>
    %10 = arith.truncf %9 : vector<8x128xf32> to vector<8x128xbf16>
    %c0_8 = arith.constant 0 : index
    %c0_9 = arith.constant 0 : index
    %11 = vector.load %arg4[%c0_8, %c0_9] : memref<128x10xbf16, #tpu.memory_space<vmem>>, vector<128x10xbf16>
    %cst_10 = arith.constant dense<0.000000e+00> : vector<8x10xf32>
    %12 = tpu.matmul %10, %11, %cst_10 {dimension_numbers = #tpu.dot_dimension_numbers<[1], [0], [0], [1], [0, 0, 1, 1], [], []>} : vector<8x128xbf16>, vector<128x10xbf16>, vector<8x10xf32> -> vector<8x10xf32>
    %cst_11 = arith.constant dense<0xFF800000> : vector<8xf32>
    %13 = vector.multi_reduction <maximumf>, %12, %cst_11 [1] : vector<8x10xf32> to vector<8xf32>
    %14 = vector.shape_cast %13 : vector<8xf32> to vector<8x1xf32>
    %15 = vector.broadcast %14 : vector<8x1xf32> to vector<8x10xf32>
    %16 = arith.subf %12, %15 : vector<8x10xf32>
    %17 = math.exp %16 : vector<8x10xf32>
    %cst_12 = arith.constant dense<0.000000e+00> : vector<8xf32>
    %18 = vector.multi_reduction <add>, %17, %cst_12 [1] : vector<8x10xf32> to vector<8xf32>
    %19 = vector.shape_cast %18 : vector<8xf32> to vector<8x1xf32>
    %20 = math.log %19 : vector<8x1xf32>
    %21 = vector.broadcast %20 : vector<8x1xf32> to vector<8x10xf32>
    %22 = arith.subf %16, %21 : vector<8x10xf32>
    %c0_13 = arith.constant 0 : index
    %c0_14 = arith.constant 0 : index
    %23 = vector.load %arg5[%c0_13, %c0_14] : memref<8x10xf32, #tpu.memory_space<vmem>>, vector<8x10xf32>
    tpu.vector_store %arg5[%c0_13, %c0_14], %22 {strides = array<i32>} : memref<8x10xf32, #tpu.memory_space<vmem>>, vector<8x10xf32>,
    return
  }
  func.func @transform_0(%arg0: i32) -> (i32, i32) {
    %c0_i32 = arith.constant 0 : i32
    %c0_i32_0 = arith.constant 0 : i32
    return %arg0, %c0_i32 : i32, i32
  }
  func.func @transform_1(%arg0: i32) -> (i32, i32) {
    %c0_i32 = arith.constant 0 : i32
    %c0_i32_0 = arith.constant 0 : i32
    %c0_i32_1 = arith.constant 0 : i32
    return %c0_i32, %c0_i32_0 : i32, i32
  }
  func.func @transform_2(%arg0: i32) -> (i32, i32) {
    %c0_i32 = arith.constant 0 : i32
    %c0_i32_0 = arith.constant 0 : i32
    %c0_i32_1 = arith.constant 0 : i32
    return %c0_i32, %c0_i32_0 : i32, i32
  }
  func.func @transform_3(%arg0: i32) -> (i32, i32) {
    %c0_i32 = arith.constant 0 : i32
    %c0_i32_0 = arith.constant 0 : i32
    %c0_i32_1 = arith.constant 0 : i32
    return %c0_i32, %c0_i32_0 : i32, i32
  }
  func.func @transform_4(%arg0: i32) -> (i32, i32) {
    %c0_i32 = arith.constant 0 : i32
    %c0_i32_0 = arith.constant 0 : i32
    return %arg0, %c0_i32 : i32, i32
  }
}

</mosaic_0001>

<bundles_post_ra>
// kernel: lenet_forward.1
= control target key start
LH: loop header
LB: loop body
LE: loop exit
PB: predicated region body
PF: predicated region fallthrough
CT: control target
= control target key end

     0   :  { %9 = vsyncpa [#allocation3], 0  ;;  %s2394_s15 = smov [#allocation2]   ;;  %s2594_s0 = inlined_call_operand.vmem [shape: bf16[8,784], index: 0, kind: input, shape index: {}]   ;;  %s2595_s1 = inlined_call_operand.hbm [shape: bf16[784,384], index: 1, kind: input, shape index: {}]   ;;  %s2596_s2 = inlined_call_operand.vmem [shape: bf16[384,128], index: 2, kind: input, shape index: {}]   ;;  %s2597_s3 = inlined_call_operand.vmem [shape: bf16[128,10], index: 3, kind: input, shape index: {}]   ;;  %s2598_s4 = inlined_call_operand.vmem [shape: f32[8,10], index: 4, kind: output, shape index: {}]  }
   0x1   :  { %s17_s16 = sshll.u32 %s2394_s15, 4  ;;  %s2370_s19 = scalar_lea.hbm %s2595_s1, 18816  ;;  %s18_s16 = int_to_ptr.vmem [resolvable:$true] %s17_s16 }
   0x2   :  { %p2371_p0 = scmp.ne.s32.totalorder %s2595_s1, %s2370_s19  ;;  %p2374_p1 = scmp.lt.u32.totalorder %s2370_s19, %s2595_s1 }
   0x4   :  { %p2376_p2 = pnand %p2374_p1, %p2371_p0 }
   0x6   :  { %2379 = shalt.err (!%p2376_p2)
}
   0x7   :  { %s2380_s24 = scalar_lea.vmem %s18_s16, 18816  ;;  %p2385_p4 = scmp.lt.s32.totalorder %s18_s16, %s18_s16 }
   0x8   :  { %p2381_p3 = scmp.ne.s32.totalorder %s18_s16, %s2380_s24  ;;  %p2386_p5 = scmp.lt.s32.totalorder %s2380_s24, %s2380_s24 }
   0xa   :  { %p2387_p6 = por %p2386_p5, %p2385_p4 }
   0xc   :  { %p2388_p7 = pnand %p2387_p6, %p2381_p3 }
   0xe   :  { %2391 = shalt.err (!%p2388_p7)
}
   0xf   :  { %s2395_s25 = smov 192   ;;  %s2396_s26 = smov 12  }
  0x10   :  { %23 = dma.hbm_to_vmem [thread:$0]  %s2595_s1, 18816, %s18_s16, [#allocation3], %s2395_s25, %s2395_s25, %s2396_s26  }
  0x11   :  { %2392 = dma.done.wait [#allocation3], 18816  }
  0x12   :  { %2393 = vsyncadd [#allocation3], 4294948480  ;;  %v2131_v0 = vld [vmem:[#allocation2 + $0x4] ss:$12 sps:$4 sm:$0xff]   ;;  %v2133_v1 = vld [vmem:[#allocation2] ss:$12 sps:$4 sm:$0xff]  }
  0x13   :  { %1044 = vmatprep.subr.bf16.mxu0 %v2131_v0  ;;  %v2134_v2 = vld [vmem:[#allocation2 + $0x1c] ss:$12 sps:$4 sm:$0xff]   ;;  %v2136_v3 = vld [vmem:[#allocation2 + $0x18] ss:$12 sps:$4 sm:$0xff]   ;;  %v2137_v4 = vld [vmem:[#allocation2 + $0x34] ss:$12 sps:$4 sm:$0xff]  }
  0x14   :  { %1045 = vmatpush1.bf16.msra.mxu0 %v2133_v1  ;;  %v2139_v5 = vld [vmem:[#allocation2 + $0x30] ss:$12 sps:$4 sm:$0xff]   ;;  %v2140_v6 = vld [vmem:[#allocation2 + $0x4c] ss:$12 sps:$4 sm:$0xff]   ;;  %v2142_v7 = vld [vmem:[#allocation2 + $0x48] ss:$12 sps:$4 sm:$0xff]  }
  0x15   :  { %1046 = vmatprep.subr.bf16.mxu0 %v2134_v2  ;;  %v2143_v8 = vld [vmem:[#allocation2 + $0x64] ss:$12 sps:$4 sm:$0xff]   ;;  %v2145_v9 = vld [vmem:[#allocation2 + $0x60] ss:$12 sps:$4 sm:$0xff]   ;;  %v2146_v10 = vld [vmem:[#allocation2 + $0x7c] ss:$12 sps:$4 sm:$0xff]  }
  0x16   :  { %v2148_v11 = vld [vmem:[#allocation2 + $0x78] ss:$12 sps:$4 sm:$0xff]   ;;  %v2149_v12 = vld [vmem:[#allocation2 + $0x94] ss:$12 sps:$4 sm:$0xff]   ;;  %v2151_v14 = vld [vmem:[#allocation2 + $0x90] ss:$12 sps:$4 sm:$0xff]  }
  0x17   :  { %v2440_v13 = vld [vmem:[%s2594_s0] sm:$0xff]  ;;  %v2152_v15 = vld [vmem:[#allocation2 + $0xac] ss:$12 sps:$4 sm:$0xff]   ;;  %v2184_v17 = vld [vmem:[#allocation2 + $0xc8] ss:$12 sps:$4 sm:$0xff]   ;;  %vm1040_vm0 = vcmask 130048  }
  0x18   :  { %1047 = vmatpush1.bf16.msra.mxu0 %v2136_v3  ;;  %v1772_v16 = vcombine.high %v2440_v13, %v2440_v13  ;;  %v2185_v18 = vld [vmem:[#allocation2 + $0x8] ss:$12 sps:$4 sm:$0xff]   ;;  %1959 = vmatprep.subr.bf16.mxu1 %v2184_v17  ;;  %v2155_v20 = vld [vmem:[#allocation2 + $0xc4] ss:$12 sps:$4 sm:$0xff]   ;;  %v2189_v21 = vld [vmem:[#allocation2 + $0xe0] ss:$12 sps:$4 sm:$0xff]   ;;  %v1771_v50 = vcombine.low %v2440_v13, %v2440_v13 }
  0x19   :  { %1048 = vmatprep.subr.bf16.mxu0 %v2137_v4  ;;  %v2154_v19 = vld [vmem:[#allocation2 + $0xa8] ss:$12 sps:$4 sm:$0xff]   ;;  %1960 = vmatpush3.bf16.msra.mxu1 %v2185_v18  ;;  %v2190_v22 = vld [vmem:[#allocation2 + $0x20] ss:$12 sps:$4 sm:$0xff]   ;;  %v2194_v24 = vld [vmem:[#allocation2 + $0xf8] ss:$12 sps:$4 sm:$0xff]  }
  0x1a   :  { %1076 = vmatprep.mubr.bf16.mxu0 %v1772_v16  ;;  %1240 = vmatprep.mubr.bf16.mxu1 %v1772_v16  ;;  %v2157_v23 = vld [vmem:[#allocation2 + $0xc0] ss:$12 sps:$4 sm:$0xff]   ;;  %v2195_v25 = vld [vmem:[#allocation2 + $0x38] ss:$12 sps:$4 sm:$0xff]   ;;  %v2158_v26 = vld [vmem:[#allocation2 + $0xdc] ss:$12 sps:$4 sm:$0xff]  }
  0x1b   :  { %1961 = vmatprep.subr.bf16.mxu1 %v2189_v21  ;;  %v2199_v27 = vld [vmem:[#allocation2 + $0x110] ss:$12 sps:$4 sm:$0xff]   ;;  %v2160_v29 = vld [vmem:[#allocation2 + $0xd8] ss:$12 sps:$4 sm:$0xff]   ;;  %v2161_v30 = vld [vmem:[#allocation2 + $0xf4] ss:$12 sps:$4 sm:$0xff]  }
  0x1c   :  { %1049 = vmatpush1.bf16.msra.mxu0 %v2139_v5  ;;  %v2200_v28 = vld [vmem:[#allocation2 + $0x50] ss:$12 sps:$4 sm:$0xff]   ;;  %v2204_v31 = vld [vmem:[#allocation2 + $0x128] ss:$12 sps:$4 sm:$0xff]   ;;  %v2164_v34 = vld [vmem:[#allocation2 + $0x10c] ss:$12 sps:$4 sm:$0xff]  }
  0x1d   :  { %1050 = vmatprep.subr.bf16.mxu0 %v2140_v6  ;;  %1962 = vmatpush3.bf16.msra.mxu1 %v2190_v22  ;;  %v2205_v32 = vld [vmem:[#allocation2 + $0x68] ss:$12 sps:$4 sm:$0xff]   ;;  %v2163_v33 = vld [vmem:[#allocation2 + $0xf0] ss:$12 sps:$4 sm:$0xff]   ;;  %v2209_v35 = vld [vmem:[#allocation2 + $0x140] ss:$12 sps:$4 sm:$0xff]  }
  0x1e   :  { %1963 = vmatprep.subr.bf16.mxu1 %v2194_v24  ;;  %v2166_v36 = vld [vmem:[#allocation2 + $0x108] ss:$12 sps:$4 sm:$0xff]   ;;  %v2210_v37 = vld [vmem:[#allocation2 + $0x80] ss:$12 sps:$4 sm:$0xff]   ;;  %v2214_v38 = vld [vmem:[#allocation2 + $0x158] ss:$12 sps:$4 sm:$0xff]  }
  0x1f   :  { %v2167_v39 = vld [vmem:[#allocation2 + $0x124] ss:$12 sps:$4 sm:$0xff]   ;;  %v2169_v40 = vld [vmem:[#allocation2 + $0x120] ss:$12 sps:$4 sm:$0xff]   ;;  %v2170_v43 = vld [vmem:[#allocation2 + $0x13c] ss:$12 sps:$4 sm:$0xff]  }
  0x20   :  { %1051 = vmatpush1.bf16.msra.mxu0 %v2142_v7  ;;  %v2215_v41 = vld [vmem:[#allocation2 + $0x98] ss:$12 sps:$4 sm:$0xff]   ;;  %v2219_v42 = vld [vmem:[#allocation2 + $0x170] ss:$12 sps:$4 sm:$0xff]   ;;  %v2224_v46 = vld [vmem:[#allocation2 + $0x248] ss:$12 sps:$4 sm:$0xff]  }
  0x21   :  { %1052 = vmatprep.subr.bf16.mxu0 %v2143_v8  ;;  %1964 = vmatpush3.bf16.msra.mxu1 %v2195_v25  ;;  %v2172_v44 = vld [vmem:[#allocation2 + $0x138] ss:$12 sps:$4 sm:$0xff]   ;;  %v2220_v45 = vld [vmem:[#allocation2 + $0xb0] ss:$12 sps:$4 sm:$0xff]   ;;  %v2173_v47 = vld [vmem:[#allocation2 + $0x154] ss:$12 sps:$4 sm:$0xff]  }
  0x22   :  { %1965 = vmatprep.subr.bf16.mxu1 %v2199_v27  ;;  %v2175_v48 = vld [vmem:[#allocation2 + $0x150] ss:$12 sps:$4 sm:$0xff]   ;;  %v2225_v49 = vld [vmem:[#allocation2 + $0x188] ss:$12 sps:$4 sm:$0xff]   ;;  %v2229_v51 = vld [vmem:[#allocation2 + $0x260] ss:$12 sps:$4 sm:$0xff]  }
  0x23   :  { %v2176_v52 = vld [vmem:[#allocation2 + $0x16c] ss:$12 sps:$4 sm:$0xff]   ;;  %v2178_v54 = vld [vmem:[#allocation2 + $0x168] ss:$12 sps:$4 sm:$0xff]   ;;  %v2183_v56 = vld [vmem:[#allocation2 + $0x184] ss:$12 sps:$4 sm:$0xff]  }
  0x24   :  { %1053 = vmatpush1.bf16.msra.mxu0 %v2145_v9  ;;  %v2230_v53 = vld [vmem:[#allocation2 + $0x1a0] ss:$12 sps:$4 sm:$0xff]   ;;  %v2234_v55 = vld [vmem:[#allocation2 + $0x278] ss:$12 sps:$4 sm:$0xff]   ;;  %v2239_v59 = vld [vmem:[#allocation2 + $0x290] ss:$12 sps:$4 sm:$0xff]  }
  0x25   :  { %1054 = vmatprep.subr.bf16.mxu0 %v2146_v10  ;;  %1966 = vmatpush3.bf16.msra.mxu1 %v2200_v28  ;;  %v2181_v57 = vld [vmem:[#allocation2 + $0x180] ss:$12 sps:$4 sm:$0xff]   ;;  %v2235_v58 = vld [vmem:[#allocation2 + $0x1b8] ss:$12 sps:$4 sm:$0xff]   ;;  %v2188_v60 = vld [vmem:[#allocation2 + $0x19c] ss:$12 sps:$4 sm:$0xff]  }
  0x26   :  { %1967 = vmatprep.subr.bf16.mxu1 %v2204_v31  ;;  %v2186_v61 = vld [vmem:[#allocation2 + $0x198] ss:$12 sps:$4 sm:$0xff]   ;;  %v2240_v62 = vld [vmem:[#allocation2 + $0x1d0] ss:$12 sps:$4 sm:$0xff]   ;;  %v2244_v63 = vld [vmem:[#allocation2 + $0x2a8] ss:$12 sps:$4 sm:$0xff]  }
  0x27   :  { %v2193_v0 = vld [vmem:[#allocation2 + $0x1b4] ss:$12 sps:$4 sm:$0xff]   ;;  %v2191_v1 = vld [vmem:[#allocation2 + $0x1b0] ss:$12 sps:$4 sm:$0xff]   ;;  %v2198_v4 = vld [vmem:[#allocation2 + $0x1cc] ss:$12 sps:$4 sm:$0xff]  }
  0x28   :  { %1055 = vmatpush1.bf16.msra.mxu0 %v2148_v11  ;;  %v2245_v2 = vld [vmem:[#allocation2 + $0x1e8] ss:$12 sps:$4 sm:$0xff]   ;;  %v2249_v3 = vld [vmem:[#allocation2 + $0x2c0] ss:$12 sps:$4 sm:$0xff]   ;;  %v2254_v7 = vld [vmem:[#allocation2 + $0x2d8] ss:$12 sps:$4 sm:$0xff]  }
  0x29   :  { %1056 = vmatprep.subr.bf16.mxu0 %v2149_v12  ;;  %1968 = vmatpush3.bf16.msra.mxu1 %v2205_v32  ;;  %v2196_v5 = vld [vmem:[#allocation2 + $0x1c8] ss:$12 sps:$4 sm:$0xff]   ;;  %v2250_v6 = vld [vmem:[#allocation2 + $0x200] ss:$12 sps:$4 sm:$0xff]   ;;  %v2203_v9 = vld [vmem:[#allocation2 + $0x1e4] ss:$12 sps:$4 sm:$0xff]  }
  0x2a   :  { %1969 = vmatprep.subr.bf16.mxu1 %v2209_v35  ;;  %v33_v8 = vld [vmem:[%s2594_s0 + $0x8] sm:$0xff]  ;;  %v2255_v11 = vld [vmem:[#allocation2 + $0x218] ss:$12 sps:$4 sm:$0xff]   ;;  %v2259_v13 = vld [vmem:[#allocation2 + $0x2f0] ss:$12 sps:$4 sm:$0xff]   ;;  %vm2398_vm1 = vmmov 0  }
  0x2b   :  { %v1774_v10 = vcombine.high %v33_v8, %v33_v8  ;;  %v2201_v12 = vld [vmem:[#allocation2 + $0x1e0] ss:$12 sps:$4 sm:$0xff]   ;;  %v2260_v16 = vld [vmem:[#allocation2 + $0x230] ss:$12 sps:$4 sm:$0xff]   ;;  %v2266_v17 = vld [vmem:[#allocation2 + $0x3c8] ss:$12 sps:$4 sm:$0xff]   ;;  %v2449_v21 = vcombine.low %v33_v8, %v33_v8 }
  0x2c   :  { %1057 = vmatpush1.bf16.msra.mxu0 %v2151_v14  ;;  %v2208_v14 = vld [vmem:[#allocation2 + $0x1fc] ss:$12 sps:$4 sm:$0xff]   ;;  %v2213_v18 = vld [vmem:[#allocation2 + $0x214] ss:$12 sps:$4 sm:$0xff]   ;;  %v2223_v27 = vld [vmem:[#allocation2 + $0x244] ss:$12 sps:$4 sm:$0xff]  }
  0x2d   :  { %1058 = vmatprep.subr.bf16.mxu0 %v2152_v15  ;;  %1970 = vmatpush3.bf16.msra.mxu1 %v2210_v37  ;;  %v2206_v15 = vld [vmem:[#allocation2 + $0x1f8] ss:$12 sps:$4 sm:$0xff]   ;;  %v2271_v22 = vld [vmem:[#allocation2 + $0x3e0] ss:$12 sps:$4 sm:$0xff]   ;;  %v2216_v24 = vld [vmem:[#allocation2 + $0x228] ss:$12 sps:$4 sm:$0xff]  }
  0x2e   :  { %1971 = vmatprep.subr.bf16.mxu1 %v2214_v38  ;;  %v2272_v25 = vld [vmem:[#allocation2 + $0x320] ss:$12 sps:$4 sm:$0xff]   ;;  %v2228_v31 = vld [vmem:[#allocation2 + $0x25c] ss:$12 sps:$4 sm:$0xff]   ;;  %vm1752_vm2 = vcmask 80896  }
  0x2f   :  { %v2221_v28 = vld [vmem:[#allocation2 + $0x240] ss:$12 sps:$4 sm:$0xff]   ;;  %v2282_v32 = vld [vmem:[#allocation2 + $0x350] ss:$12 sps:$4 sm:$0xff]   ;;  %v2287_v37 = vld [vmem:[#allocation2 + $0x368] ss:$12 sps:$4 sm:$0xff]  }
  0x30   :  { %1059 = vmatpush1.bf16.msra.mxu0 %v2154_v19  ;;  %v2211_v19 = vld [vmem:[#allocation2 + $0x210] ss:$12 sps:$4 sm:$0xff]   ;;  %v2233_v35 = vld [vmem:[#allocation2 + $0x274] ss:$12 sps:$4 sm:$0xff]  }
  0x31   :  { %1060 = vmatprep.subr.bf16.mxu0 %v2155_v20  ;;  %1972 = vmatpush3.bf16.msra.mxu1 %v2215_v41  ;;  %v2267_v20 = vld [vmem:[#allocation2 + $0x308] ss:$12 sps:$4 sm:$0xff]   ;;  %v2291_v38 = vld [vmem:[#allocation2 + $0x440] ss:$12 sps:$4 sm:$0xff]  }
  0x32   :  { %1973 = vmatprep.subr.bf16.mxu1 %v2219_v42  ;;  %v2292_v42 = vld [vmem:[#allocation2 + $0x380] ss:$12 sps:$4 sm:$0xff]  }
  0x33   :  { %v2295_v8 = vld [vmem:[#allocation2 + $0x394] ss:$12 sps:$4 sm:$0xff]  }
  0x34   :  { %1061 = vmatpush1.bf16.msra.mxu0 %v2157_v23  ;;  %v2218_v23 = vld [vmem:[#allocation2 + $0x22c] ss:$12 sps:$4 sm:$0xff]  }
  0x35   :  { %1062 = vmatprep.subr.bf16.mxu0 %v2158_v26  ;;  %1974 = vmatpush3.bf16.msra.mxu1 %v2220_v45  ;;  %v2276_v26 = vld [vmem:[#allocation2 + $0x3f8] ss:$12 sps:$4 sm:$0xff]  }
  0x36   :  { %1981 = vmatprep.subr.bf16.mxu1 %v2224_v46  ;;  %v2243_v45 = vld [vmem:[#allocation2 + $0x2a4] ss:$12 sps:$4 sm:$0xff]  }
  0x37   :  { %v2297_v46 = vld [vmem:[#allocation2 + $0x398] ss:$12 sps:$4 sm:$0xff]  }
  0x38   :  { %1063 = vmatpush1.bf16.msra.mxu0 %v2160_v29  ;;  %1241 = vmatmul.mubr.bf16.vlgmr.msra.gmra.mrb[0].mxu1 %v1771_v50  ;;  %v2277_v29 = vld [vmem:[#allocation2 + $0x338] ss:$12 sps:$4 sm:$0xff]  }
  0x39   :  { %1064 = vmatprep.subr.bf16.mxu0 %v2161_v30  ;;  %1982 = vmatpush3.bf16.msra.mxu1 %v2225_v49  ;;  %v2281_v30 = vld [vmem:[#allocation2 + $0x410] ss:$12 sps:$4 sm:$0xff]  }
  0x3a   :  { %1983 = vmatprep.subr.bf16.mxu1 %v2229_v51  ;;  %1280 = vmatprep.mubr.bf16.mxu1 %v1774_v10  ;;  %v2248_v49 = vld [vmem:[#allocation2 + $0x2bc] ss:$12 sps:$4 sm:$0xff]   ;;  %v2246_v51 = vld [vmem:[#allocation2 + $0x2b8] ss:$12 sps:$4 sm:$0xff]  }
  0x3c   :  { %1065 = vmatpush1.bf16.msra.mxu0 %v2163_v33  ;;  %v2226_v33 = vld [vmem:[#allocation2 + $0x258] ss:$12 sps:$4 sm:$0xff]  }
  0x3d   :  { %1066 = vmatprep.subr.bf16.mxu0 %v2164_v34  ;;  %1984 = vmatpush3.bf16.msra.mxu1 %v2230_v53  ;;  %v2286_v34 = vld [vmem:[#allocation2 + $0x428] ss:$12 sps:$4 sm:$0xff]  }
  0x3e   :  { %1985 = vmatprep.subr.bf16.mxu1 %v2234_v55  ;;  %v2311_v53 = vld [vmem:[#allocation2 + $0x488] ss:$12 sps:$4 sm:$0xff]  }
  0x40   :  { %1067 = vmatpush1.bf16.msra.mxu0 %v2166_v36  ;;  %v2231_v36 = vld [vmem:[#allocation2 + $0x270] ss:$12 sps:$4 sm:$0xff]  }
  0x41   :  { %1068 = vmatprep.subr.bf16.mxu0 %v2167_v39  ;;  %1986 = vmatpush3.bf16.msra.mxu1 %v2235_v58  ;;  %v34_v39 = vld [vmem:[%s2594_s0 + $0x10] sm:$0xff] }
  0x42   :  { %1987 = vmatprep.subr.bf16.mxu1 %v2239_v59  ;;  %v1776_v41 = vcombine.high %v34_v39, %v34_v39  ;;  %v2455_v55 = vcombine.low %v34_v39, %v34_v39  ;;  %v2256_v58 = vld [vmem:[#allocation2 + $0x2e8] ss:$12 sps:$4 sm:$0xff]   ;;  %v2265_v59 = vld [vmem:[#allocation2 + $0x304] ss:$12 sps:$4 sm:$0xff]  }
  0x43   :  { %v2342_v39 = vld [vmem:[%s2596_s2 + $0x60] sm:$0xff]  }
  0x44   :  { %1069 = vmatpush1.bf16.msra.mxu0 %v2169_v40  ;;  %v2238_v40 = vld [vmem:[#allocation2 + $0x28c] ss:$12 sps:$4 sm:$0xff]  }
  0x45   :  { %1070 = vmatprep.subr.bf16.mxu0 %v2170_v43  ;;  %1988 = vmatpush3.bf16.msra.mxu1 %v2240_v62  ;;  %v2236_v43 = vld [vmem:[#allocation2 + $0x288] ss:$12 sps:$4 sm:$0xff]  }
  0x46   :  { %1989 = vmatprep.subr.bf16.mxu1 %v2244_v63  ;;  %v2270_v62 = vld [vmem:[#allocation2 + $0x31c] ss:$12 sps:$4 sm:$0xff]   ;;  %v2268_v63 = vld [vmem:[#allocation2 + $0x318] ss:$12 sps:$4 sm:$0xff]  }
  0x48   :  { %1071 = vmatpush1.bf16.msra.mxu0 %v2172_v44  ;;  %v2296_v44 = vld [vmem:[#allocation2 + $0x458] ss:$12 sps:$4 sm:$0xff]  }
  0x49   :  { %1072 = vmatprep.subr.bf16.mxu0 %v2173_v47  ;;  %1990 = vmatpush3.bf16.msra.mxu1 %v2245_v2  ;;  %v2241_v47 = vld [vmem:[#allocation2 + $0x2a0] ss:$12 sps:$4 sm:$0xff]  }
  0x4a   :  { %1991 = vmatprep.subr.bf16.mxu1 %v2249_v3  ;;  %v2280_v2 = vld [vmem:[#allocation2 + $0x34c] ss:$12 sps:$4 sm:$0xff]   ;;  %v2278_v3 = vld [vmem:[#allocation2 + $0x348] ss:$12 sps:$4 sm:$0xff]  }
  0x4c   :  { %1073 = vmatpush1.bf16.msra.mxu0 %v2175_v48  ;;  %v2301_v48 = vld [vmem:[#allocation2 + $0x470] ss:$12 sps:$4 sm:$0xff]  }
  0x4d   :  { %1074 = vmatprep.subr.bf16.mxu0 %v2176_v52  ;;  %1992 = vmatpush3.bf16.msra.mxu1 %v2250_v6  ;;  %v2253_v52 = vld [vmem:[#allocation2 + $0x2d4] ss:$12 sps:$4 sm:$0xff]   ;;  %v2290_v6 = vld [vmem:[#allocation2 + $0x37c] ss:$12 sps:$4 sm:$0xff]  }
  0x4e   :  { %1993 = vmatprep.subr.bf16.mxu1 %v2254_v7  ;;  %v2288_v7 = vld [vmem:[#allocation2 + $0x378] ss:$12 sps:$4 sm:$0xff]  }
  0x50   :  { %1075 = vmatpush1.bf16.msra.mxu0 %v2178_v54  ;;  %v2251_v54 = vld [vmem:[#allocation2 + $0x2d0] ss:$12 sps:$4 sm:$0xff]  }
  0x51   :  { %1085 = vmatprep.subr.bf16.mxu0 %v2183_v56  ;;  %1994 = vmatpush3.bf16.msra.mxu1 %v2255_v11  ;;  %v2258_v56 = vld [vmem:[#allocation2 + $0x2ec] ss:$12 sps:$4 sm:$0xff]   ;;  %v2298_v11 = vld [vmem:[#allocation2 + $0x3a8] ss:$12 sps:$4 sm:$0xff]  }
  0x52   :  { %1995 = vmatprep.subr.bf16.mxu1 %v2259_v13  ;;  %v2303_v13 = vld [vmem:[#allocation2 + $0x3c0] ss:$12 sps:$4 sm:$0xff]  }
  0x53   :  { %1077 = vmatmul.mubr.bf16.vlgmr.msra.gmra.mrb[0].mxu0 %v1771_v50  ;;  %v2302_v50 = vld [vmem:[#allocation2 + $0x3b0] ss:$12 sps:$4 sm:$0xff]  }
  0x54   :  { %1086 = vmatpush1.bf16.msra.mxu0 %v2181_v57  ;;  %1117 = vmatprep.mubr.bf16.mxu0 %v1774_v10  ;;  %v2397_v57 = vmov 0.0   ;;  %v2300_v10 = vld [vmem:[#allocation2 + $0x3ac] ss:$12 sps:$4 sm:$0xff]  }
  0x55   :  { %1087 = vmatprep.subr.bf16.mxu0 %v2188_v60  ;;  %1996 = vmatpush3.bf16.msra.mxu1 %v2260_v16  ;;  %v2464_v60 = vld [vmem:[%s2594_s0 + $0x18] ss:$0 sps:$4 sm:$0xff]   ;;  %v2314_v16 = vld [vmem:[#allocation2 + $0x3f4] ss:$12 sps:$4 sm:$0xff]  }
  0x56   :  { %2003 = vmatprep.subr.bf16.mxu1 %v2266_v17  ;;  %v2312_v17 = vld [vmem:[#allocation2 + $0x3f0] ss:$12 sps:$4 sm:$0xff]  }
  0x58   :  { %1088 = vmatpush1.bf16.msra.mxu0 %v2186_v61  ;;  %1281 = vmatmul.mubr.bf16.vlgmr.msra.gmra.mrb[4].mxu1 %v2449_v21  ;;  %v2263_v61 = vld [vmem:[#allocation2 + $0x300] ss:$12 sps:$4 sm:$0xff]  }
  0x59   :  { %1089 = vmatprep.subr.bf16.mxu0 %v2193_v0  ;;  %2004 = vmatpush3.bf16.msra.mxu1 %v2267_v20  ;;  %v2275_v0 = vld [vmem:[#allocation2 + $0x334] ss:$12 sps:$4 sm:$0xff]   ;;  %v2321_v20 = vld [vmem:[#allocation2 + $0x424] ss:$12 sps:$4 sm:$0xff]  }
  0x5a   :  { %2005 = vmatprep.subr.bf16.mxu1 %v2271_v22  ;;  %1320 = vmatprep.mubr.bf16.mxu1 %v1776_v41  ;;  %v2324_v22 = vld [vmem:[#allocation2 + $0x43c] ss:$12 sps:$4 sm:$0xff]  }
  0x5c   :  { %1090 = vmatpush1.bf16.msra.mxu0 %v2191_v1  ;;  %v2273_v1 = vld [vmem:[#allocation2 + $0x330] ss:$12 sps:$4 sm:$0xff]  }
  0x5d   :  { %1091 = vmatprep.subr.bf16.mxu0 %v2198_v4  ;;  %2006 = vmatpush3.bf16.msra.mxu1 %v2272_v25  ;;  %v2285_v4 = vld [vmem:[#allocation2 + $0x364] ss:$12 sps:$4 sm:$0xff]  }
  0x5e   :  { %2007 = vmatprep.subr.bf16.mxu1 %v2276_v26  ;;  %v2325_v25 = vld [vmem:[#allocation2 + $0x450] ss:$12 sps:$4 sm:$0xff]   ;;  %v2330_v26 = vld [vmem:[#allocation2 + $0x46c] ss:$12 sps:$4 sm:$0xff]  }
  0x60   :  { %1092 = vmatpush1.bf16.msra.mxu0 %v2196_v5  ;;  %v2283_v5 = vld [vmem:[#allocation2 + $0x360] ss:$12 sps:$4 sm:$0xff]  }
  0x61   :  { %1093 = vmatprep.subr.bf16.mxu0 %v2203_v9  ;;  %2008 = vmatpush3.bf16.msra.mxu1 %v2277_v29  ;;  %v2293_v9 = vld [vmem:[#allocation2 + $0x390] ss:$12 sps:$4 sm:$0xff]   ;;  %v2331_v29 = vld [vmem:[#allocation2 + $0x480] ss:$12 sps:$4 sm:$0xff]  }
  0x62   :  { %2009 = vmatprep.subr.bf16.mxu1 %v2281_v30  ;;  %v2399_v30 = vmov 0  }
  0x64   :  { %1094 = vmatpush1.bf16.msra.mxu0 %v2201_v12  ;;  %v2305_v12 = vld [vmem:[#allocation2 + $0x3c4] ss:$12 sps:$4 sm:$0xff]  }
  0x65   :  { %1095 = vmatprep.subr.bf16.mxu0 %v2208_v14  ;;  %2010 = vmatpush3.bf16.msra.mxu1 %v2282_v32  ;;  %v2310_v14 = vld [vmem:[#allocation2 + $0x3dc] ss:$12 sps:$4 sm:$0xff]   ;;  %v2335_v32 = vld [vmem:[%s2596_s2] sm:$0xff]  }
  0x66   :  { %2011 = vmatprep.subr.bf16.mxu1 %v2286_v34  ;;  %v2337_v34 = vld [vmem:[%s2596_s2 + $0x8] sm:$0xff]  }
  0x68   :  { %1096 = vmatpush1.bf16.msra.mxu0 %v2206_v15  ;;  %v2308_v15 = vld [vmem:[#allocation2 + $0x3d8] ss:$12 sps:$4 sm:$0xff]  }
  0x69   :  { %1097 = vmatprep.subr.bf16.mxu0 %v2213_v18  ;;  %2012 = vmatpush3.bf16.msra.mxu1 %v2287_v37  ;;  %v2318_v18 = vld [vmem:[#allocation2 + $0x40c] ss:$12 sps:$4 sm:$0xff]  }
  0x6a   :  { %2013 = vmatprep.subr.bf16.mxu1 %v2291_v38  ;;  %v2340_v37 = vld [vmem:[%s2596_s2 + $0x58] sm:$0xff]  }
  0x6b   :  { %v2341_v38 = vld [vmem:[%s2596_s2 + $0x18] sm:$0xff]  }
  0x6c   :  { %1098 = vmatpush1.bf16.msra.mxu0 %v2211_v19  ;;  %v2316_v19 = vld [vmem:[#allocation2 + $0x408] ss:$12 sps:$4 sm:$0xff]  }
  0x6d   :  { %1099 = vmatprep.subr.bf16.mxu0 %v2218_v23  ;;  %2014 = vmatpush3.bf16.msra.mxu1 %v2292_v42  ;;  %v2322_v23 = vld [vmem:[#allocation2 + $0x438] ss:$12 sps:$4 sm:$0xff]   ;;  %v2345_v42 = vld [vmem:[%s2596_s2 + $0x28] sm:$0xff]  }
  0x6e   :  { %2015 = vmatprep.subr.bf16.mxu1 %v2296_v44  ;;  %v2347_v44 = vld [vmem:[%s2596_s2 + $0x30] sm:$0xff]  }
  0x70   :  { %1100 = vmatpush1.bf16.msra.mxu0 %v2216_v24  ;;  %v2327_v24 = vld [vmem:[#allocation2 + $0x454] ss:$12 sps:$4 sm:$0xff]  }
  0x71   :  { %1101 = vmatprep.subr.bf16.mxu0 %v2223_v27  ;;  %2016 = vmatpush3.bf16.msra.mxu1 %v2297_v46  ;;  %v2328_v27 = vld [vmem:[#allocation2 + $0x468] ss:$12 sps:$4 sm:$0xff]  }
  0x72   :  { %2017 = vmatprep.subr.bf16.mxu1 %v2301_v48 }
  0x74   :  { %1102 = vmatpush1.bf16.msra.mxu0 %v2221_v28  ;;  %v2333_v28 = vld [vmem:[#allocation2 + $0x484] ss:$12 sps:$4 sm:$0xff]  }
  0x75   :  { %1103 = vmatprep.subr.bf16.mxu0 %v2228_v31  ;;  %2018 = vmatpush3.bf16.msra.mxu1 %v2302_v50  ;;  %v2334_v31 = vld [vmem:[%s2596_s2 + $0x40] sm:$0xff]   ;;  %v2348_v50 = vld [vmem:[%s2596_s2 + $0x78] sm:$0xff]  }
  0x76   :  { %2067 = vmatprep.subr.bf16.mxu1 %v2397_v57 }
  0x78   :  { %1104 = vmatpush1.bf16.msra.mxu0 %v2226_v33  ;;  %1321 = vmatmul.mubr.bf16.vlgmr.msra.gmra.mrb[8].mxu1 %v2455_v55  ;;  %v2336_v33 = vld [vmem:[%s2596_s2 + $0x48] sm:$0xff]  }
  0x79   :  { %1105 = vmatprep.subr.bf16.mxu0 %v2233_v35  ;;  %2068 = vmatpush3.bf16.msra.mxu1 %v2311_v53  ;;  %v2338_v35 = vld [vmem:[%s2596_s2 + $0x50] sm:$0xff]  }
  0x7a   :  { %2069 = vmatprep.mubr.msk.bf16.mxu1 %vm2398_vm1, %v2397_v57  ;;  %2027 = vmatprep.subr.bf16.mxu1 %v2334_v31  ;;  %v2365_v31 = vld [vmem:[%s2597_s3 + $0x38] sm:$0xff]  }
  0x7c   :  { %1106 = vmatpush1.bf16.msra.mxu0 %v2231_v36  ;;  %v2339_v36 = vld [vmem:[%s2596_s2 + $0x10] sm:$0xff]  }
  0x7d   :  { %1107 = vmatprep.subr.bf16.mxu0 %v2238_v40  ;;  %v2343_v40 = vld [vmem:[%s2596_s2 + $0x20] sm:$0xff]  }
  0x80   :  { %1108 = vmatpush1.bf16.msra.mxu0 %v2236_v43  ;;  %2070 = vmatmul.mubr.msk.bf16.vlgmr.msra.gmra.mrb[12].mxu1 %vm1040_vm0, %v2464_v60  ;;  %v2346_v43 = vld [vmem:[%s2596_s2 + $0x70] sm:$0xff]  }
  0x81   :  { %1109 = vmatprep.subr.bf16.mxu0 %v2243_v45  ;;  %2028 = vmatpush3.bf16.msra.mxu1 %v2335_v32 }
  0x82   :  { %2029 = vmatprep.subr.bf16.mxu1 %v2336_v33 }
  0x84   :  { %1110 = vmatpush1.bf16.msra.mxu0 %v2241_v47 }
  0x85   :  { %1111 = vmatprep.subr.bf16.mxu0 %v2248_v49  ;;  %2030 = vmatpush3.bf16.msra.mxu1 %v2337_v34 }
  0x86   :  { %2031 = vmatprep.subr.bf16.mxu1 %v2338_v35 }
  0x88   :  { %1112 = vmatpush1.bf16.msra.mxu0 %v2246_v51  ;;  %v2349_v51 = vld [vmem:[%s2596_s2 + $0x38] sm:$0xff]  }
  0x89   :  { %1113 = vmatprep.subr.bf16.mxu0 %v2253_v52  ;;  %2032 = vmatpush3.bf16.msra.mxu1 %v2339_v36 }
  0x8a   :  { %2033 = vmatprep.subr.bf16.mxu1 %v2340_v37 }
  0x8c   :  { %1114 = vmatpush1.bf16.msra.mxu0 %v2251_v54 }
  0x8d   :  { %1115 = vmatprep.subr.bf16.mxu0 %v2258_v56  ;;  %2034 = vmatpush3.bf16.msra.mxu1 %v2341_v38 }
  0x8e   :  { %2035 = vmatprep.subr.bf16.mxu1 %v2342_v39 }
  0x90   :  { %1116 = vmatpush1.bf16.msra.mxu0 %v2256_v58 }
  0x91   :  { %1126 = vmatprep.subr.bf16.mxu0 %v2265_v59  ;;  %2036 = vmatpush3.bf16.msra.mxu1 %v2343_v40 }
  0x93   :  { %1118 = vmatmul.mubr.bf16.vlgmr.msra.gmra.mrb[0].mxu0 %v2449_v21  ;;  %v2319_v21 = vld [vmem:[#allocation2 + $0x420] ss:$12 sps:$4 sm:$0xff]  }
  0x94   :  { %1127 = vmatpush1.bf16.msra.mxu0 %v2263_v61  ;;  %1158 = vmatprep.mubr.bf16.mxu0 %v1776_v41  ;;  %v2344_v41 = vld [vmem:[%s2596_s2 + $0x68] sm:$0xff]  }
  0x95   :  { %1128 = vmatprep.subr.bf16.mxu0 %v2270_v62  ;;  %2037 = vmatprep.subr.bf16.mxu1 %v2344_v41 }
  0x96   :  { %2038 = vmatpush3.bf16.msra.mxu1 %v2345_v42 }
  0x97   :  { %2039 = vmatprep.subr.bf16.mxu1 %v2346_v43 }
  0x98   :  { %1129 = vmatpush1.bf16.msra.mxu0 %v2268_v63 }
  0x99   :  { %1130 = vmatprep.subr.bf16.mxu0 %v2275_v0 }
  0x9a   :  { %2040 = vmatpush3.bf16.msra.mxu1 %v2347_v44 }
  0x9b   :  { %2041 = vmatprep.subr.bf16.mxu1 %v2348_v50 }
  0x9c   :  { %1131 = vmatpush1.bf16.msra.mxu0 %v2273_v1 }
  0x9d   :  { %1132 = vmatprep.subr.bf16.mxu0 %v2280_v2 }
  0x9e   :  { %2042 = vmatpush3.bf16.msra.mxu1 %v2349_v51 }
  0x9f   :  { %2073 = vmatprep.subr.bf16.mxu1 %v2397_v57 }
  0xa0   :  { %1133 = vmatpush1.bf16.msra.mxu0 %v2278_v3 }
  0xa1   :  { %1134 = vmatprep.subr.bf16.mxu0 %v2285_v4 }
  0xa4   :  { %1135 = vmatpush1.bf16.msra.mxu0 %v2283_v5 }
  0xa5   :  { %1136 = vmatprep.subr.bf16.mxu0 %v2290_v6 }
  0xa8   :  { %1137 = vmatpush1.bf16.msra.mxu0 %v2288_v7 }
  0xa9   :  { %1138 = vmatprep.subr.bf16.mxu0 %v2295_v8 }
  0xac   :  { %1139 = vmatpush1.bf16.msra.mxu0 %v2293_v9 }
  0xad   :  { %1140 = vmatprep.subr.bf16.mxu0 %v2300_v10 }
  0xb0   :  { %1141 = vmatpush1.bf16.msra.mxu0 %v2298_v11 }
  0xb1   :  { %1142 = vmatprep.subr.bf16.mxu0 %v2305_v12 }
  0xb4   :  { %1143 = vmatpush1.bf16.msra.mxu0 %v2303_v13  ;;  %v2350_v13 = vld [vmem:[%s2596_s2 + $0x80] sm:$0xff]  }
  0xb5   :  { %1144 = vmatprep.subr.bf16.mxu0 %v2310_v14 }
  0xb8   :  { %1145 = vmatpush1.bf16.msra.mxu0 %v2308_v15  ;;  %v2351_v15 = vld [vmem:[%s2596_s2 + $0x88] sm:$0xff]  }
  0xb9   :  { %1146 = vmatprep.subr.bf16.mxu0 %v2314_v16  ;;  %v2352_v16 = vld [vmem:[%s2596_s2 + $0x90] sm:$0xff]  }
  0xbc   :  { %1147 = vmatpush1.bf16.msra.mxu0 %v2312_v17  ;;  %v2353_v17 = vld [vmem:[%s2596_s2 + $0x98] sm:$0xff]  }
  0xbd   :  { %1148 = vmatprep.subr.bf16.mxu0 %v2318_v18  ;;  %v2354_v18 = vld [vmem:[%s2596_s2 + $0xa0] sm:$0xff]  }
  0xc0   :  { %1149 = vmatpush1.bf16.msra.mxu0 %v2316_v19  ;;  %v2355_v19 = vld [vmem:[%s2596_s2 + $0xa8] sm:$0xff]  }
  0xc1   :  { %1150 = vmatprep.subr.bf16.mxu0 %v2321_v20  ;;  %v2356_v20 = vld [vmem:[%s2596_s2 + $0xb0] sm:$0xff]  }
  0xc4   :  { %1151 = vmatpush1.bf16.msra.mxu0 %v2319_v21  ;;  %v2357_v21 = vld [vmem:[%s2596_s2 + $0xb8] sm:$0xff]  }
  0xc5   :  { %1152 = vmatprep.subr.bf16.mxu0 %v2324_v22 }
  0xc8   :  { %1153 = vmatpush1.bf16.msra.mxu0 %v2322_v23 }
  0xc9   :  { %1154 = vmatprep.subr.bf16.mxu0 %v2327_v24  ;;  %v2358_v24 = vld [vmem:[%s2597_s3] sm:$0xff]  }
  0xcc   :  { %1155 = vmatpush1.bf16.msra.mxu0 %v2325_v25  ;;  %v2359_v25 = vld [vmem:[%s2597_s3 + $0x8] sm:$0xff]  }
  0xcd   :  { %1156 = vmatprep.subr.bf16.mxu0 %v2330_v26  ;;  %v2360_v26 = vld [vmem:[%s2597_s3 + $0x10] sm:$0xff]  }
  0xd0   :  { %1157 = vmatpush1.bf16.msra.mxu0 %v2328_v27  ;;  %v2361_v27 = vld [vmem:[%s2597_s3 + $0x18] sm:$0xff]  }
  0xd1   :  { %1167 = vmatprep.subr.bf16.mxu0 %v2333_v28  ;;  %v2362_v28 = vld [vmem:[%s2597_s3 + $0x20] sm:$0xff]  }
  0xd3   :  { %1159 = vmatmul.mubr.bf16.vlgmr.msra.gmra.mrb[0].mxu0 %v2455_v55 }
  0xd4   :  { %1168 = vmatpush1.bf16.msra.mxu0 %v2331_v29  ;;  %1199 = vmatprep.mubr.bf16.mxu0 %v2399_v30  ;;  %v2363_v29 = vld [vmem:[%s2597_s3 + $0x28] sm:$0xff]   ;;  %v2364_v30 = vld [vmem:[%s2597_s3 + $0x30] sm:$0xff]  }
  0xdf   :  { %1925 = vmatmul.mubr.msk.bf16.vlgmr.msra.gmra.mrb[0].mxu0 %vm1040_vm0, %v2464_v60 }
 0x10b   :  { %v1975_v45 = vpop.f32.mrb[0].mxu1 }
 0x10c   :  { %v1976_v46 = vpop.f32.mrb[1].mxu1 }
 0x10d   :  { %v1977_v47 = vadd.f32 %v1976_v46, %v1975_v45  ;;  %v1978_v48 = vpop.f32.mrb[2].mxu1 }
 0x10e   :  { %v1979_v49 = vpop.f32.mrb[3].mxu1 }
 0x12b   :  { %v1997_v52 = vpop.f32.mrb[4].mxu1 }
 0x12c   :  { %v1998_v53 = vpop.f32.mrb[5].mxu1 }
 0x12d   :  { %v1999_v54 = vadd.f32 %v1998_v53, %v1997_v52  ;;  %v2000_v55 = vpop.f32.mrb[6].mxu1 }
 0x12e   :  { %v2001_v56 = vpop.f32.mrb[7].mxu1 }
 0x12f   :  { %v1283_v58 = vadd.f32 %v1999_v54, %v1977_v47 }
 0x14b   :  { %v2019_v59 = vpop.f32.mrb[8].mxu1 }
 0x14c   :  { %v2020_v60 = vpop.f32.mrb[9].mxu1 }
 0x14d   :  { %v2021_v61 = vadd.f32 %v2020_v60, %v2019_v59  ;;  %v2022_v62 = vpop.f32.mrb[10].mxu1 }
 0x14e   :  { %v2023_v63 = vpop.f32.mrb[11].mxu1 }
 0x14f   :  { %v1323_v0 = vadd.f32 %v2021_v61, %v1283_v58 }
 0x153   :  { %v1362_v1 = vpop.f32.mrb[12].mxu1 }
 0x154   :  { %v1363_v2 = vadd.f32 %v1362_v1, %v1323_v0  ;;  %v2071_v3 = vpop.f32.mrb[13].mxu1 }
 0x155   :  { %v1365_v4 = vpop.f32.mrb[14].mxu1 }
 0x156   :  { %v2072_v5 = vpop.f32.mrb[15].mxu1  ;;  %v1370_v22 = vmax.f32 %v1363_v2, 0.0 }
 0x158   :  { %v1373_v23 = vpack.c.bf16 %v1370_v22, %v1370_v22 }
 0x1b2   :  { %v1201_v6 = vpop.f32.mrb[0].mxu0 }
 0x1b3   :  { %v1368_v7 = vmax.f32 %v1201_v6, 0.0  ;;  %v1203_v8 = vpop.f32.mrb[1].mxu0 }
 0x1b4   :  { %v1369_v9 = vmax.f32 %v1203_v8, 0.0  ;;  %v1205_v10 = vpop.f32.mrb[2].mxu0 }
 0x1b5   :  { %v1206_v11 = vpop.f32.mrb[3].mxu0  ;;  %v1371_v14 = vpack.c.bf16 %v1368_v7, %v1368_v7 }
 0x1b6   :  { %v1372_v12 = vpack.c.bf16 %v1369_v9, %v1369_v9 }
 0x1b8   :  { %1598 = vmatprep.mubr.bf16.mxu1 %v1372_v12 }
 0x1b9   :  { %1599 = vmatmul.mubr.bf16.vlgmr.msra.gmra.mrb[16].mxu1 %v1371_v14 }
 0x1ba   :  { %2074 = vmatpush3.bf16.msra.mxu1 %v2350_v13  ;;  %2089 = vmatprep.mubr.msk.bf16.mxu1 %vm2398_vm1, %v2397_v57 }
 0x1bb   :  { %2075 = vmatprep.subr.bf16.mxu1 %v2397_v57 }
 0x1be   :  { %2076 = vmatpush3.bf16.msra.mxu1 %v2351_v15 }
 0x1bf   :  { %2077 = vmatprep.subr.bf16.mxu1 %v2397_v57 }
 0x1c2   :  { %2078 = vmatpush3.bf16.msra.mxu1 %v2352_v16 }
 0x1c3   :  { %2079 = vmatprep.subr.bf16.mxu1 %v2397_v57 }
 0x1c6   :  { %2080 = vmatpush3.bf16.msra.mxu1 %v2353_v17 }
 0x1c7   :  { %2081 = vmatprep.subr.bf16.mxu1 %v2397_v57 }
 0x1ca   :  { %2082 = vmatpush3.bf16.msra.mxu1 %v2354_v18 }
 0x1cb   :  { %2083 = vmatprep.subr.bf16.mxu1 %v2397_v57 }
 0x1ce   :  { %2084 = vmatpush3.bf16.msra.mxu1 %v2355_v19 }
 0x1cf   :  { %2085 = vmatprep.subr.bf16.mxu1 %v2397_v57 }
 0x1d2   :  { %2086 = vmatpush3.bf16.msra.mxu1 %v2356_v20 }
 0x1d3   :  { %2087 = vmatprep.subr.bf16.mxu1 %v2397_v57 }
 0x1d6   :  { %2088 = vmatpush3.bf16.msra.mxu1 %v2357_v21 }
 0x1d7   :  { %2093 = vmatprep.subr.bf16.mxu1 %v2397_v57 }
 0x1d9   :  { %2090 = vmatmul.mubr.bf16.vlgmr.msra.gmra.mrb[20].mxu1 %v1373_v23 }
 0x1da   :  { %2109 = vmatprep.mubr.msk.bf16.mxu1 %vm2398_vm1, %v2397_v57  ;;  %2094 = vmatpush3.bf16.msra.mxu1 %v2358_v24 }
 0x1db   :  { %2095 = vmatprep.subr.bf16.mxu1 %v2397_v57 }
 0x1de   :  { %2096 = vmatpush3.bf16.msra.mxu1 %v2359_v25 }
 0x1df   :  { %2097 = vmatprep.subr.bf16.mxu1 %v2397_v57 }
 0x1e2   :  { %2098 = vmatpush3.bf16.msra.mxu1 %v2360_v26 }
 0x1e3   :  { %2099 = vmatprep.subr.bf16.mxu1 %v2397_v57 }
 0x1e6   :  { %2100 = vmatpush3.bf16.msra.mxu1 %v2361_v27 }
 0x1e7   :  { %2101 = vmatprep.subr.bf16.mxu1 %v2397_v57 }
 0x1ea   :  { %2102 = vmatpush3.bf16.msra.mxu1 %v2362_v28 }
 0x1eb   :  { %2103 = vmatprep.subr.bf16.mxu1 %v2397_v57 }
 0x1ee   :  { %2104 = vmatpush3.bf16.msra.mxu1 %v2363_v29 }
 0x1ef   :  { %2105 = vmatprep.subr.bf16.mxu1 %v2397_v57 }
 0x1f2   :  { %2106 = vmatpush3.bf16.msra.mxu1 %v2364_v30 }
 0x1f3   :  { %2107 = vmatprep.subr.bf16.mxu1 %v2397_v57 }
 0x1f6   :  { %2108 = vmatpush3.bf16.msra.mxu1 %v2365_v31 }
 0x28c   :  { %v2043_v32 = vpop.f32.mrb[16].mxu1 }
 0x28d   :  { %v2044_v33 = vpop.f32.mrb[17].mxu1 }
 0x28e   :  { %v2045_v34 = vadd.f32 %v2044_v33, %v2043_v32  ;;  %v2046_v35 = vpop.f32.mrb[18].mxu1 }
 0x28f   :  { %v2047_v36 = vpop.f32.mrb[19].mxu1 }
 0x2ac   :  { %v1640_v37 = vpop.f32.mrb[20].mxu1 }
 0x2ad   :  { %v1641_v38 = vadd.f32 %v2045_v34, %v1640_v37  ;;  %v2091_v39 = vpop.f32.mrb[21].mxu1 }
 0x2ae   :  { %v1643_v40 = vpop.f32.mrb[22].mxu1 }
 0x2af   :  { %v1646_v41 = vmax.f32 %v1641_v38, 0.0  ;;  %v2092_v42 = vpop.f32.mrb[23].mxu1 }
 0x2b1   :  { %v1647_v43 = vpack.c.bf16 %v1646_v41, %v1646_v41 }
 0x2b3   :  { %2110 = vmatmul.mubr.bf16.vlgmr.msra.gmra.mrb[24].mxu1 %v1647_v43 }
 0x386   :  { %v1746_v57 = vpop.f32.mrb[24].mxu1 }
 0x387   :  { %v2111_v44 = vpop.f32.mrb[25].mxu1  ;;  %v1753_v45 = vsel %vm1752_vm2, %v1746_v57, -inf }
 0x388   :  { %1754 = vmax.xlane.f32.xlu0 %v1753_v45  ;;  %v1749_v46 = vpop.f32.mrb[26].mxu1 }
 0x389   :  { %v2112_v47 = vpop.f32.mrb[27].mxu1 }
 0x415   :  { %v1755_v48 = vpop.xlane.xlu0 %1754 }
 0x416   :  { %v1756_v49 = vsub.f32 %v1746_v57, %v1755_v48 }
 0x418   :  { %v1757_v50 = vmul.f32 1.442695, %v1756_v49 }
 0x41a   :  { %2366 = vpow2.f32 %v1757_v50 }
 0x424   :  { %v2367_v51 = vpop.eup %2366 }
 0x425   :  { %v1759_v52 = vsel %vm1752_vm2, %v2367_v51, 0.0 }
 0x426   :  { %1760 = vadd.xlane.f32.xlu0 %v1759_v52 }
 0x4b3   :  { %v1761_v53 = vpop.xlane.xlu0 %1760 }
 0x4b4   :  { %2368 = vlog2.f32 %v1761_v53 }
 0x4be   :  { %v2369_v54 = vpop.eup %2368 }
 0x4bf   :  { %v1763_v55 = vmul.f32 0.6931472, %v2369_v54 }
 0x4c1   :  { %v1764_v56 = vsub.f32 %v1756_v49, %v1763_v55 }
 0x4c3   :  { %1765 = vst.msk [vmem:[%s2598_s4] sm:$0xff] %vm1752_vm2, %v1764_v56 }
 0x4c4   :  { %1770 = vsyncpa [#allocation3], 1 }

</bundles_post_ra>
